<compile_context>
chip_gen: v6e
topology: v6e:2x2x1
jax: 0.10.0
libtpu: 0.0.40
codegen_flags: <defaults>
</compile_context>

<pallas_src>
import functools

import jax
import jax.numpy as jnp
from jax.experimental import pallas as pl
from jax.experimental.pallas import tpu as pltpu


def _round_up(x, m):
    return ((x + m - 1) // m) * m


def _loss_kernel(cw_ref, logits_ref, tgt_ref, invw_ref,
                 num_out_ref, val_out_ref, num_acc, val_acc,
                 *, num_classes, rows_tile):
    """Grid = (batch, outer pixel chunk, inner pixel tile).

    One step processes a (K, rows_tile, 128) pixel-dense block of image b;
    partial sums live in (rows_tile, 128) VMEM scratch and are folded to an
    (8, 128) per-(b, outer) output slab on the last inner tile."""
    b = pl.program_id(0)
    t = pl.program_id(2)
    K = num_classes

    @pl.when(t == 0)
    def _():
        num_acc[...] = jnp.zeros_like(num_acc)
        val_acc[...] = jnp.zeros_like(val_acc)

    # ---- pass 1: running max over classes (stable softmax) -----------------
    m = logits_ref[0, 0].astype(jnp.float32)
    for k in range(1, K):
        m = jnp.maximum(m, logits_ref[0, k].astype(jnp.float32))

    # ---- pass 2: se = sum_k exp(x_k - m), sa = sum_k t_k*exp(x_k - m) ------
    se = jnp.zeros((rows_tile, 128), jnp.float32)
    sa = jnp.zeros((rows_tile, 128), jnp.float32)
    wsum = jnp.zeros((rows_tile, 128), jnp.float32)
    for k in range(K):
        x = logits_ref[0, k].astype(jnp.float32)
        tk = tgt_ref[0, k].astype(jnp.float32)
        e = jnp.exp(x - m)
        se = se + e
        sa = sa + tk * e
        wsum = wsum + tk

    log_se = jnp.log(se)
    # log(agg); -inf on ignored / padded pixels, but it only ever feeds a
    # max() against the always-finite log-softmax, so no NaNs appear.
    log_agg = jnp.log(sa) - log_se

    # ---- pass 3: S = sum_k t_k * cw_k * log(max(soft_k, t_k * agg)) --------
    # Exact for 0/1 relaxed labels: where t_k == 1 it is max(log_soft, log_agg),
    # where t_k == 0 the term is multiplied by 0 anyway.
    S = jnp.zeros((rows_tile, 128), jnp.float32)
    for k in range(K):
        x = logits_ref[0, k].astype(jnp.float32)
        tk = tgt_ref[0, k].astype(jnp.float32)
        csm = jnp.maximum(x - m - log_se, log_agg)
        S = S + tk * (cw_ref[b, k] * csm)

    valid = (wsum > 0.0).astype(jnp.float32)       # 1 - ignore_mask; padding -> 0
    num_acc[...] = num_acc[...] + (-invw_ref[...]) * S * valid
    val_acc[...] = val_acc[...] + valid

    @pl.when(t == pl.num_programs(2) - 1)
    def _():
        num_out_ref[...] = jnp.sum(
            num_acc[...].reshape(rows_tile // 8, 8, 128), axis=0
        ).reshape(1, 1, 8, 128)
        val_out_ref[...] = jnp.sum(
            val_acc[...].reshape(rows_tile // 8, 8, 128), axis=0
        ).reshape(1, 1, 8, 128)


def img_wt_loss_soft_nll(inputs, target, upper_bound=1.0, rows_tile=None):
    """inputs: (B, K, H, W) logits; target: (B, K+1, H, W) relaxed labels
    (first K channels = 0/1 multi-hot labels, last channel = border/ignore)."""
    B, K, H, W = inputs.shape
    assert target.shape == (B, K + 1, H, W)
    P = H * W

    # keep native dtypes for the big streams (no HBM f32 copies)
    logits = inputs.reshape(B, K, P)
    tgt_lbl = target[:, :K].reshape(B, K, P)      # border channel never DMA'd

    # ---- small reductions done once in XLA ---------------------------------
    tgt_f = target.reshape(B, K + 1, P).astype(jnp.float32)

    # per-image class weights: calculate_weights(target[i]) with norm=False
    tsum = jnp.sum(tgt_f, axis=2)                                   # (B, K+1)
    tot = jnp.maximum(jnp.sum(tsum, axis=1, keepdims=True), 1.0)    # guard empty
    hist = tsum / tot
    cw = jnp.where(hist != 0.0, upper_bound * (1.0 - hist), 0.0) + 1.0
    cw = cw[:, :K].astype(jnp.float32)                              # (B, K) -> SMEM

    # each image's loss is broadcast against the full-batch border weights in
    # the reference, so only sum_b 1/w_b is needed per pixel.
    w = jnp.sum(tgt_f[:, :K, :], axis=1)                            # (B, P)
    w = jnp.where(w == 0.0, 1.0, w)
    inv_w_sum = jnp.sum(1.0 / w, axis=0)                            # (P,) f32

    # ---- pixel-dense 4-D layout & per-generation tile sizing ---------------
    R = -(-P // 128)                                   # rows of 128 pixels
    logit_b = inputs.dtype.itemsize
    tgt_b = target.dtype.itemsize
    try:
        vmem_cap = int(pltpu.get_tpu_info().vmem_capacity_bytes)
    except Exception:                                  # interpret mode / old jax
        vmem_cap = 64 * 1024 * 1024
    # bytes per row of 128 px: double-buffered input blocks + ~16 live
    # (rows_tile, 128) f32 slabs of kernel working set / accumulators.
    per_row = 2 * 128 * (K * logit_b + K * tgt_b + 4) + 16 * 128 * 4
    if rows_tile is None:
        rows_tile = max(8, (int(vmem_cap * 0.45) // per_row) // 8 * 8)
    rows_tile = int(max(8, (int(rows_tile) // 8) * 8))
    rows_tile = min(rows_tile, _round_up(R, 8))

    n_tiles = -(-R // rows_tile)
    # give both v7x TensorCores work even when the batch axis is tiny
    n_outer = 2 if (B == 1 and n_tiles >= 2) else 1
    n_tiles = _round_up(n_tiles, n_outer)
    n_inner = n_tiles // n_outer
    R_pad = n_tiles * rows_tile
    P_pad = R_pad * 128

    if P_pad != P:
        pad = P_pad - P
        # zero padding: padded pixels have tgt == 0 -> valid == 0, so they add
        # nothing to either the numerator or the valid-pixel count.
        logits = jnp.pad(logits, ((0, 0), (0, 0), (0, pad)))
        tgt_lbl = jnp.pad(tgt_lbl, ((0, 0), (0, 0), (0, pad)))
        inv_w_sum = jnp.pad(inv_w_sum, ((0, pad),))

    logits4 = logits.reshape(B, K, R_pad, 128)
    tgt4 = tgt_lbl.reshape(B, K, R_pad, 128)
    invw4 = inv_w_sum.reshape(R_pad, 128)

    vmem_limit = int(min(vmem_cap * 0.9,
                         max(rows_tile * per_row * 1.25, 32 * 1024 * 1024)))

    kernel = functools.partial(_loss_kernel, num_classes=K, rows_tile=rows_tile)

    num_out, val_out = pl.pallas_call(
        kernel,
        out_shape=(jax.ShapeDtypeStruct((B, n_outer, 8, 128), jnp.float32),
                   jax.ShapeDtypeStruct((B, n_outer, 8, 128), jnp.float32)),
        grid=(B, n_outer, n_inner),
        in_specs=[
            pl.BlockSpec(memory_space=pltpu.MemorySpace.SMEM),        # cw (B, K)
            pl.BlockSpec((1, K, rows_tile, 128),
                         lambda b, o, t: (b, 0, o * n_inner + t, 0)),  # logits
            pl.BlockSpec((1, K, rows_tile, 128),
                         lambda b, o, t: (b, 0, o * n_inner + t, 0)),  # targets
            pl.BlockSpec((rows_tile, 128),
                         lambda b, o, t: (o * n_inner + t, 0)),        # sum_b 1/w_b
        ],
        out_specs=(
            pl.BlockSpec((1, 1, 8, 128), lambda b, o, t: (b, o, 0, 0)),
            pl.BlockSpec((1, 1, 8, 128), lambda b, o, t: (b, o, 0, 0)),
        ),
        scratch_shapes=[
            pltpu.VMEM((rows_tile, 128), jnp.float32),   # numerator partials
            pltpu.VMEM((rows_tile, 128), jnp.float32),   # valid-pixel partials
        ],
        compiler_params=pltpu.CompilerParams(
            dimension_semantics=("parallel", "parallel", "arbitrary"),
            vmem_limit_bytes=vmem_limit,
        ),
    )(cw, logits4, tgt4, invw4)

    num_i = jnp.sum(num_out, axis=(1, 2, 3))     # (B,)
    val_i = jnp.sum(val_out, axis=(1, 2, 3))     # (B,)
    # per-image denominator: H*W - mask_i.sum() + 1 == (#valid pixels) + 1
    return jnp.sum(num_i / (val_i + 1.0))


def _reference_loss(inputs, target, upper_bound=1.0):
    """Pure-JAX transcription of the PyTorch forward (for verification)."""
    B, K, H, W = inputs.shape
    weights = jnp.sum(target[:, :-1], axis=1)                    # (B, H, W)
    ignore_mask = weights == 0
    weights = jnp.where(ignore_mask, 1.0, weights)
    total = jnp.float32(0.0)
    for i in range(B):
        t = target[i]
        hist = jnp.sum(t, axis=(1, 2)) / jnp.sum(t)
        cw = jnp.where(hist != 0.0, upper_bound * (1.0 - hist), 0.0) + 1.0
        cw = cw[:-1]
        soft = jax.nn.softmax(inputs[i], axis=0)
        mh = t[:-1]
        agg = jnp.sum(soft * mh, axis=0, keepdims=True)
        csm = jnp.log(jnp.maximum(soft, mh * agg))
        S = jnp.sum(mh * cw[:, None, None] * csm, axis=0)        # (H, W)
        mask = ignore_mask[i].astype(jnp.float32)
        lm = (-1.0 / weights) * S[None] * (1.0 - mask)[None]     # (B, H, W)
        denom = H * W - jnp.sum(mask) + 1.0
        total = total + jnp.sum(lm) / denom
    return total


if __name__ == "__main__":
    key = jax.random.PRNGKey(0)
    B, K, H, W = 2, 4, 16, 16
    k1, k2, k3, k4 = jax.random.split(key, 4)

    # logits
    inputs = jax.random.normal(k1, (B, K, H, W), dtype=jnp.float32)

    # relaxed multi-hot target: K 0/1 label channels + 1 border/ignore channel
    labels = jax.random.randint(k2, (B, H, W), 0, K)
    onehot = jax.nn.one_hot(labels, K, dtype=jnp.float32)               # (B,H,W,K)
    extra = jax.nn.one_hot(jax.random.randint(k3, (B, H, W), 0, K), K,
                           dtype=jnp.float32)
    multi = jnp.clip(onehot + extra, 0.0, 1.0)                          # multi-hot
    ignore = (jax.random.uniform(k4, (B, H, W)) < 0.1).astype(jnp.float32)
    multi = multi * (1.0 - ignore)[..., None]                           # zero label chans
    target = jnp.concatenate(
        [jnp.transpose(multi, (0, 3, 1, 2)), ignore[:, None, :, :]], axis=1
    )                                                                    # (B, K+1, H, W)

    loss = img_wt_loss_soft_nll(inputs, target)
    loss = jax.block_until_ready(loss)

    ref = jax.block_until_ready(_reference_loss(inputs, target))
    assert jnp.allclose(loss, ref, rtol=1e-4, atol=1e-5), (loss, ref)

    print("KERNEL_OK")
</pallas_src>

<mosaic_0001>
module attributes {stable_mosaic.version = 11 : i64} {
  func.func @_loss_kernel(%arg0: i32, %arg1: i32, %arg2: i32, %arg3: memref<2x4xf32, #tpu.memory_space<smem>>, %arg4: memref<1x4x8x128xf32, #tpu.memory_space<vmem>>, %arg5: memref<1x4x8x128xf32, #tpu.memory_space<vmem>>, %arg6: memref<8x128xf32, #tpu.memory_space<vmem>>, %arg7: memref<1x1x8x128xf32, #tpu.memory_space<vmem>>, %arg8: memref<1x1x8x128xf32, #tpu.memory_space<vmem>>, %arg9: memref<8x128xf32, #tpu.memory_space<vmem>>, %arg10: memref<8x128xf32, #tpu.memory_space<vmem>>) attributes {dimension_semantics = [#tpu.dimension_semantics<parallel>, #tpu.dimension_semantics<parallel>, #tpu.dimension_semantics<arbitrary>], iteration_bounds = array<i64: 2, 1, 1>, scalar_prefetch = 0 : i64, scratch_operands = 2 : i64, tpu.core_type = #tpu.core_type<tc>, window_params = [{transform_indices = @transform_0, window_bounds = array<i64: 2, 4>}, {transform_indices = @transform_1, window_bounds = array<i64: 1, 4, 8, 128>}, {transform_indices = @transform_2, window_bounds = array<i64: 1, 4, 8, 128>}, {transform_indices = @transform_3, window_bounds = array<i64: 8, 128>}, {transform_indices = @transform_4, window_bounds = array<i64: 1, 1, 8, 128>}, {transform_indices = @transform_5, window_bounds = array<i64: 1, 1, 8, 128>}]} {
    %c0_i32 = arith.constant 0 : i32
    %0 = arith.cmpi eq, %arg2, %c0_i32 : i32
    %1 = arith.extui %0 : i1 to i32
    %c0_i32_0 = arith.constant 0 : i32
    %2 = arith.cmpi ne, %1, %c0_i32_0 : i32
    scf.if %2 {
      %cst_98 = arith.constant 0.000000e+00 : f32
      %131 = vector.broadcast %cst_98 : f32 to vector<8x128xf32>
      %c0_99 = arith.constant 0 : index
      %c0_100 = arith.constant 0 : index
      %132 = vector.load %arg9[%c0_99, %c0_100] : memref<8x128xf32, #tpu.memory_space<vmem>>, vector<8x128xf32>
      tpu.vector_store %arg9[%c0_99, %c0_100], %131 {strides = array<i32>} : memref<8x128xf32, #tpu.memory_space<vmem>>, vector<8x128xf32>,
      %cst_101 = arith.constant 0.000000e+00 : f32
      %133 = vector.broadcast %cst_101 : f32 to vector<8x128xf32>
      %c0_102 = arith.constant 0 : index
      %c0_103 = arith.constant 0 : index
      %134 = vector.load %arg10[%c0_102, %c0_103] : memref<8x128xf32, #tpu.memory_space<vmem>>, vector<8x128xf32>
      tpu.vector_store %arg10[%c0_102, %c0_103], %133 {strides = array<i32>} : memref<8x128xf32, #tpu.memory_space<vmem>>, vector<8x128xf32>,
    } else {
    }
    %c0 = arith.constant 0 : index
    %c0_1 = arith.constant 0 : index
    %c0_2 = arith.constant 0 : index
    %c0_3 = arith.constant 0 : index
    %3 = vector.load %arg4[%c0, %c0_1, %c0_2, %c0_3] : memref<1x4x8x128xf32, #tpu.memory_space<vmem>>, vector<1x1x8x128xf32>
    %4 = vector.shape_cast %3 : vector<1x1x8x128xf32> to vector<8x128xf32>
    %c0_4 = arith.constant 0 : index
    %c1 = arith.constant 1 : index
    %c0_5 = arith.constant 0 : index
    %c0_6 = arith.constant 0 : index
    %5 = vector.load %arg4[%c0_4, %c1, %c0_5, %c0_6] : memref<1x4x8x128xf32, #tpu.memory_space<vmem>>, vector<1x1x8x128xf32>
    %6 = vector.shape_cast %5 : vector<1x1x8x128xf32> to vector<8x128xf32>
    %7 = arith.maximumf %4, %6 : vector<8x128xf32>
    %c0_7 = arith.constant 0 : index
    %c2 = arith.constant 2 : index
    %c0_8 = arith.constant 0 : index
    %c0_9 = arith.constant 0 : index
    %8 = vector.load %arg4[%c0_7, %c2, %c0_8, %c0_9] : memref<1x4x8x128xf32, #tpu.memory_space<vmem>>, vector<1x1x8x128xf32>
    %9 = vector.shape_cast %8 : vector<1x1x8x128xf32> to vector<8x128xf32>
    %10 = arith.maximumf %7, %9 : vector<8x128xf32>
    %c0_10 = arith.constant 0 : index
    %c3 = arith.constant 3 : index
    %c0_11 = arith.constant 0 : index
    %c0_12 = arith.constant 0 : index
    %11 = vector.load %arg4[%c0_10, %c3, %c0_11, %c0_12] : memref<1x4x8x128xf32, #tpu.memory_space<vmem>>, vector<1x1x8x128xf32>
    %12 = vector.shape_cast %11 : vector<1x1x8x128xf32> to vector<8x128xf32>
    %13 = arith.maximumf %10, %12 : vector<8x128xf32>
    %cst = arith.constant 0.000000e+00 : f32
    %14 = vector.broadcast %cst : f32 to vector<8x128xf32>
    %cst_13 = arith.constant 0.000000e+00 : f32
    %15 = vector.broadcast %cst_13 : f32 to vector<8x128xf32>
    %cst_14 = arith.constant 0.000000e+00 : f32
    %16 = vector.broadcast %cst_14 : f32 to vector<8x128xf32>
    %c0_15 = arith.constant 0 : index
    %c0_16 = arith.constant 0 : index
    %c0_17 = arith.constant 0 : index
    %c0_18 = arith.constant 0 : index
    %17 = vector.load %arg4[%c0_15, %c0_16, %c0_17, %c0_18] : memref<1x4x8x128xf32, #tpu.memory_space<vmem>>, vector<1x1x8x128xf32>
    %18 = vector.shape_cast %17 : vector<1x1x8x128xf32> to vector<8x128xf32>
    %c0_19 = arith.constant 0 : index
    %c0_20 = arith.constant 0 : index
    %c0_21 = arith.constant 0 : index
    %c0_22 = arith.constant 0 : index
    %19 = vector.load %arg5[%c0_19, %c0_20, %c0_21, %c0_22] : memref<1x4x8x128xf32, #tpu.memory_space<vmem>>, vector<1x1x8x128xf32>
    %20 = vector.shape_cast %19 : vector<1x1x8x128xf32> to vector<8x128xf32>
    %21 = arith.subf %18, %13 : vector<8x128xf32>
    %22 = math.exp %21 : vector<8x128xf32>
    %23 = arith.addf %14, %22 : vector<8x128xf32>
    %24 = arith.mulf %20, %22 : vector<8x128xf32>
    %25 = arith.addf %15, %24 : vector<8x128xf32>
    %26 = arith.addf %16, %20 : vector<8x128xf32>
    %c0_23 = arith.constant 0 : index
    %c1_24 = arith.constant 1 : index
    %c0_25 = arith.constant 0 : index
    %c0_26 = arith.constant 0 : index
    %27 = vector.load %arg4[%c0_23, %c1_24, %c0_25, %c0_26] : memref<1x4x8x128xf32, #tpu.memory_space<vmem>>, vector<1x1x8x128xf32>
    %28 = vector.shape_cast %27 : vector<1x1x8x128xf32> to vector<8x128xf32>
    %c0_27 = arith.constant 0 : index
    %c1_28 = arith.constant 1 : index
    %c0_29 = arith.constant 0 : index
    %c0_30 = arith.constant 0 : index
    %29 = vector.load %arg5[%c0_27, %c1_28, %c0_29, %c0_30] : memref<1x4x8x128xf32, #tpu.memory_space<vmem>>, vector<1x1x8x128xf32>
    %30 = vector.shape_cast %29 : vector<1x1x8x128xf32> to vector<8x128xf32>
    %31 = arith.subf %28, %13 : vector<8x128xf32>
    %32 = math.exp %31 : vector<8x128xf32>
    %33 = arith.addf %23, %32 : vector<8x128xf32>
    %34 = arith.mulf %30, %32 : vector<8x128xf32>
    %35 = arith.addf %25, %34 : vector<8x128xf32>
    %36 = arith.addf %26, %30 : vector<8x128xf32>
    %c0_31 = arith.constant 0 : index
    %c2_32 = arith.constant 2 : index
    %c0_33 = arith.constant 0 : index
    %c0_34 = arith.constant 0 : index
    %37 = vector.load %arg4[%c0_31, %c2_32, %c0_33, %c0_34] : memref<1x4x8x128xf32, #tpu.memory_space<vmem>>, vector<1x1x8x128xf32>
    %38 = vector.shape_cast %37 : vector<1x1x8x128xf32> to vector<8x128xf32>
    %c0_35 = arith.constant 0 : index
    %c2_36 = arith.constant 2 : index
    %c0_37 = arith.constant 0 : index
    %c0_38 = arith.constant 0 : index
    %39 = vector.load %arg5[%c0_35, %c2_36, %c0_37, %c0_38] : memref<1x4x8x128xf32, #tpu.memory_space<vmem>>, vector<1x1x8x128xf32>
    %40 = vector.shape_cast %39 : vector<1x1x8x128xf32> to vector<8x128xf32>
    %41 = arith.subf %38, %13 : vector<8x128xf32>
    %42 = math.exp %41 : vector<8x128xf32>
    %43 = arith.addf %33, %42 : vector<8x128xf32>
    %44 = arith.mulf %40, %42 : vector<8x128xf32>
    %45 = arith.addf %35, %44 : vector<8x128xf32>
    %46 = arith.addf %36, %40 : vector<8x128xf32>
    %c0_39 = arith.constant 0 : index
    %c3_40 = arith.constant 3 : index
    %c0_41 = arith.constant 0 : index
    %c0_42 = arith.constant 0 : index
    %47 = vector.load %arg4[%c0_39, %c3_40, %c0_41, %c0_42] : memref<1x4x8x128xf32, #tpu.memory_space<vmem>>, vector<1x1x8x128xf32>
    %48 = vector.shape_cast %47 : vector<1x1x8x128xf32> to vector<8x128xf32>
    %c0_43 = arith.constant 0 : index
    %c3_44 = arith.constant 3 : index
    %c0_45 = arith.constant 0 : index
    %c0_46 = arith.constant 0 : index
    %49 = vector.load %arg5[%c0_43, %c3_44, %c0_45, %c0_46] : memref<1x4x8x128xf32, #tpu.memory_space<vmem>>, vector<1x1x8x128xf32>
    %50 = vector.shape_cast %49 : vector<1x1x8x128xf32> to vector<8x128xf32>
    %51 = arith.subf %48, %13 : vector<8x128xf32>
    %52 = math.exp %51 : vector<8x128xf32>
    %53 = arith.addf %43, %52 : vector<8x128xf32>
    %54 = arith.mulf %50, %52 : vector<8x128xf32>
    %55 = arith.addf %45, %54 : vector<8x128xf32>
    %56 = arith.addf %46, %50 : vector<8x128xf32>
    %57 = math.log %53 : vector<8x128xf32>
    %58 = math.log %55 : vector<8x128xf32>
    %59 = arith.subf %58, %57 : vector<8x128xf32>
    %cst_47 = arith.constant 0.000000e+00 : f32
    %60 = vector.broadcast %cst_47 : f32 to vector<8x128xf32>
    %c0_48 = arith.constant 0 : index
    %c0_49 = arith.constant 0 : index
    %c0_50 = arith.constant 0 : index
    %c0_51 = arith.constant 0 : index
    %61 = vector.load %arg4[%c0_48, %c0_49, %c0_50, %c0_51] : memref<1x4x8x128xf32, #tpu.memory_space<vmem>>, vector<1x1x8x128xf32>
    %62 = vector.shape_cast %61 : vector<1x1x8x128xf32> to vector<8x128xf32>
    %c0_52 = arith.constant 0 : index
    %c0_53 = arith.constant 0 : index
    %c0_54 = arith.constant 0 : index
    %c0_55 = arith.constant 0 : index
    %63 = vector.load %arg5[%c0_52, %c0_53, %c0_54, %c0_55] : memref<1x4x8x128xf32, #tpu.memory_space<vmem>>, vector<1x1x8x128xf32>
    %64 = vector.shape_cast %63 : vector<1x1x8x128xf32> to vector<8x128xf32>
    %65 = arith.subf %62, %13 : vector<8x128xf32>
    %66 = arith.subf %65, %57 : vector<8x128xf32>
    %67 = arith.maximumf %66, %59 : vector<8x128xf32>
    %68 = arith.index_cast %arg0 : i32 to index
    %c0_56 = arith.constant 0 : index
    %69 = memref.load %arg3[%68, %c0_56] : memref<2x4xf32, #tpu.memory_space<smem>>
    %70 = vector.broadcast %69 : f32 to vector<8x128xf32>
    %71 = arith.mulf %70, %67 : vector<8x128xf32>
    %72 = arith.mulf %64, %71 : vector<8x128xf32>
    %73 = arith.addf %60, %72 : vector<8x128xf32>
    %c0_57 = arith.constant 0 : index
    %c1_58 = arith.constant 1 : index
    %c0_59 = arith.constant 0 : index
    %c0_60 = arith.constant 0 : index
    %74 = vector.load %arg4[%c0_57, %c1_58, %c0_59, %c0_60] : memref<1x4x8x128xf32, #tpu.memory_space<vmem>>, vector<1x1x8x128xf32>
    %75 = vector.shape_cast %74 : vector<1x1x8x128xf32> to vector<8x128xf32>
    %c0_61 = arith.constant 0 : index
    %c1_62 = arith.constant 1 : index
    %c0_63 = arith.constant 0 : index
    %c0_64 = arith.constant 0 : index
    %76 = vector.load %arg5[%c0_61, %c1_62, %c0_63, %c0_64] : memref<1x4x8x128xf32, #tpu.memory_space<vmem>>, vector<1x1x8x128xf32>
    %77 = vector.shape_cast %76 : vector<1x1x8x128xf32> to vector<8x128xf32>
    %78 = arith.subf %75, %13 : vector<8x128xf32>
    %79 = arith.subf %78, %57 : vector<8x128xf32>
    %80 = arith.maximumf %79, %59 : vector<8x128xf32>
    %81 = arith.index_cast %arg0 : i32 to index
    %c1_65 = arith.constant 1 : index
    %82 = memref.load %arg3[%81, %c1_65] : memref<2x4xf32, #tpu.memory_space<smem>>
    %83 = vector.broadcast %82 : f32 to vector<8x128xf32>
    %84 = arith.mulf %83, %80 : vector<8x128xf32>
    %85 = arith.mulf %77, %84 : vector<8x128xf32>
    %86 = arith.addf %73, %85 : vector<8x128xf32>
    %c0_66 = arith.constant 0 : index
    %c2_67 = arith.constant 2 : index
    %c0_68 = arith.constant 0 : index
    %c0_69 = arith.constant 0 : index
    %87 = vector.load %arg4[%c0_66, %c2_67, %c0_68, %c0_69] : memref<1x4x8x128xf32, #tpu.memory_space<vmem>>, vector<1x1x8x128xf32>
    %88 = vector.shape_cast %87 : vector<1x1x8x128xf32> to vector<8x128xf32>
    %c0_70 = arith.constant 0 : index
    %c2_71 = arith.constant 2 : index
    %c0_72 = arith.constant 0 : index
    %c0_73 = arith.constant 0 : index
    %89 = vector.load %arg5[%c0_70, %c2_71, %c0_72, %c0_73] : memref<1x4x8x128xf32, #tpu.memory_space<vmem>>, vector<1x1x8x128xf32>
    %90 = vector.shape_cast %89 : vector<1x1x8x128xf32> to vector<8x128xf32>
    %91 = arith.subf %88, %13 : vector<8x128xf32>
    %92 = arith.subf %91, %57 : vector<8x128xf32>
    %93 = arith.maximumf %92, %59 : vector<8x128xf32>
    %94 = arith.index_cast %arg0 : i32 to index
    %c2_74 = arith.constant 2 : index
    %95 = memref.load %arg3[%94, %c2_74] : memref<2x4xf32, #tpu.memory_space<smem>>
    %96 = vector.broadcast %95 : f32 to vector<8x128xf32>
    %97 = arith.mulf %96, %93 : vector<8x128xf32>
    %98 = arith.mulf %90, %97 : vector<8x128xf32>
    %99 = arith.addf %86, %98 : vector<8x128xf32>
    %c0_75 = arith.constant 0 : index
    %c3_76 = arith.constant 3 : index
    %c0_77 = arith.constant 0 : index
    %c0_78 = arith.constant 0 : index
    %100 = vector.load %arg4[%c0_75, %c3_76, %c0_77, %c0_78] : memref<1x4x8x128xf32, #tpu.memory_space<vmem>>, vector<1x1x8x128xf32>
    %101 = vector.shape_cast %100 : vector<1x1x8x128xf32> to vector<8x128xf32>
    %c0_79 = arith.constant 0 : index
    %c3_80 = arith.constant 3 : index
    %c0_81 = arith.constant 0 : index
    %c0_82 = arith.constant 0 : index
    %102 = vector.load %arg5[%c0_79, %c3_80, %c0_81, %c0_82] : memref<1x4x8x128xf32, #tpu.memory_space<vmem>>, vector<1x1x8x128xf32>
    %103 = vector.shape_cast %102 : vector<1x1x8x128xf32> to vector<8x128xf32>
    %104 = arith.subf %101, %13 : vector<8x128xf32>
    %105 = arith.subf %104, %57 : vector<8x128xf32>
    %106 = arith.maximumf %105, %59 : vector<8x128xf32>
    %107 = arith.index_cast %arg0 : i32 to index
    %c3_83 = arith.constant 3 : index
    %108 = memref.load %arg3[%107, %c3_83] : memref<2x4xf32, #tpu.memory_space<smem>>
    %109 = vector.broadcast %108 : f32 to vector<8x128xf32>
    %110 = arith.mulf %109, %106 : vector<8x128xf32>
    %111 = arith.mulf %103, %110 : vector<8x128xf32>
    %112 = arith.addf %99, %111 : vector<8x128xf32>
    %cst_84 = arith.constant 0.000000e+00 : f32
    %113 = vector.broadcast %cst_84 : f32 to vector<8x128xf32>
    %114 = arith.cmpf ogt, %56, %113 : vector<8x128xf32>
    %115 = arith.extui %114 : vector<8x128xi1> to vector<8x128xi32>
    %116 = arith.sitofp %115 : vector<8x128xi32> to vector<8x128xf32>
    %c0_85 = arith.constant 0 : index
    %c0_86 = arith.constant 0 : index
    %117 = vector.load %arg9[%c0_85, %c0_86] : memref<8x128xf32, #tpu.memory_space<vmem>>, vector<8x128xf32>
    %c0_87 = arith.constant 0 : index
    %c0_88 = arith.constant 0 : index
    %118 = vector.load %arg6[%c0_87, %c0_88] : memref<8x128xf32, #tpu.memory_space<vmem>>, vector<8x128xf32>
    %cst_89 = arith.constant 0.000000e+00 : f32
    %119 = vector.broadcast %cst_89 : f32 to vector<8x128xf32>
    %120 = arith.subf %119, %118 : vector<8x128xf32>
    %121 = arith.mulf %120, %112 : vector<8x128xf32>
    %122 = arith.mulf %121, %116 : vector<8x128xf32>
    %123 = arith.addf %117, %122 : vector<8x128xf32>
    %c0_90 = arith.constant 0 : index
    %c0_91 = arith.constant 0 : index
    %124 = vector.load %arg9[%c0_90, %c0_91] : memref<8x128xf32, #tpu.memory_space<vmem>>, vector<8x128xf32>
    tpu.vector_store %arg9[%c0_90, %c0_91], %123 {strides = array<i32>} : memref<8x128xf32, #tpu.memory_space<vmem>>, vector<8x128xf32>,
    %c0_92 = arith.constant 0 : index
    %c0_93 = arith.constant 0 : index
    %125 = vector.load %arg10[%c0_92, %c0_93] : memref<8x128xf32, #tpu.memory_space<vmem>>, vector<8x128xf32>
    %126 = arith.addf %125, %116 : vector<8x128xf32>
    %c0_94 = arith.constant 0 : index
    %c0_95 = arith.constant 0 : index
    %127 = vector.load %arg10[%c0_94, %c0_95] : memref<8x128xf32, #tpu.memory_space<vmem>>, vector<8x128xf32>
    tpu.vector_store %arg10[%c0_94, %c0_95], %126 {strides = array<i32>} : memref<8x128xf32, #tpu.memory_space<vmem>>, vector<8x128xf32>,
    %c0_i32_96 = arith.constant 0 : i32
    %128 = arith.cmpi eq, %arg2, %c0_i32_96 : i32
    %129 = arith.extui %128 : i1 to i32
    %c0_i32_97 = arith.constant 0 : i32
    %130 = arith.cmpi ne, %129, %c0_i32_97 : i32
    scf.if %130 {
      %c0_98 = arith.constant 0 : index
      %c0_99 = arith.constant 0 : index
      %131 = vector.load %arg9[%c0_98, %c0_99] : memref<8x128xf32, #tpu.memory_space<vmem>>, vector<8x128xf32>
      %132 = vector.shape_cast %131 : vector<8x128xf32> to vector<1x8x128xf32>
      %cst_100 = arith.constant dense<0.000000e+00> : vector<8x128xf32>
      %133 = vector.multi_reduction <add>, %132, %cst_100 [0] : vector<1x8x128xf32> to vector<8x128xf32>
      %134 = vector.shape_cast %133 : vector<8x128xf32> to vector<1x1x8x128xf32>
      %c0_101 = arith.constant 0 : index
      %c0_102 = arith.constant 0 : index
      %c0_103 = arith.constant 0 : index
      %c0_104 = arith.constant 0 : index
      %135 = vector.load %arg7[%c0_101, %c0_102, %c0_103, %c0_104] : memref<1x1x8x128xf32, #tpu.memory_space<vmem>>, vector<1x1x8x128xf32>
      tpu.vector_store %arg7[%c0_101, %c0_102, %c0_103, %c0_104], %134 {strides = array<i32>} : memref<1x1x8x128xf32, #tpu.memory_space<vmem>>, vector<1x1x8x128xf32>,
      %c0_105 = arith.constant 0 : index
      %c0_106 = arith.constant 0 : index
      %136 = vector.load %arg10[%c0_105, %c0_106] : memref<8x128xf32, #tpu.memory_space<vmem>>, vector<8x128xf32>
      %137 = vector.shape_cast %136 : vector<8x128xf32> to vector<1x8x128xf32>
      %cst_107 = arith.constant dense<0.000000e+00> : vector<8x128xf32>
      %138 = vector.multi_reduction <add>, %137, %cst_107 [0] : vector<1x8x128xf32> to vector<8x128xf32>
      %139 = vector.shape_cast %138 : vector<8x128xf32> to vector<1x1x8x128xf32>
      %c0_108 = arith.constant 0 : index
      %c0_109 = arith.constant 0 : index
      %c0_110 = arith.constant 0 : index
      %c0_111 = arith.constant 0 : index
      %140 = vector.load %arg8[%c0_108, %c0_109, %c0_110, %c0_111] : memref<1x1x8x128xf32, #tpu.memory_space<vmem>>, vector<1x1x8x128xf32>
      tpu.vector_store %arg8[%c0_108, %c0_109, %c0_110, %c0_111], %139 {strides = array<i32>} : memref<1x1x8x128xf32, #tpu.memory_space<vmem>>, vector<1x1x8x128xf32>,
    } else {
    }
    return
  }
  func.func @transform_0(%arg0: i32, %arg1: i32, %arg2: i32) -> (i32, i32) {
    %c0_i32 = arith.constant 0 : i32
    %c0_i32_0 = arith.constant 0 : i32
    %c0_i32_1 = arith.constant 0 : i32
    return %c0_i32, %c0_i32_0 : i32, i32
  }
  func.func @transform_1(%arg0: i32, %arg1: i32, %arg2: i32) -> (i32, i32, i32, i32) {
    %c1_i32 = arith.constant 1 : i32
    %0 = arith.muli %arg1, %c1_i32 : i32
    %1 = arith.addi %0, %arg2 : i32
    %c0_i32 = arith.constant 0 : i32
    %c0_i32_0 = arith.constant 0 : i32
    %c0_i32_1 = arith.constant 0 : i32
    return %arg0, %c0_i32, %1, %c0_i32_0 : i32, i32, i32, i32
  }
  func.func @transform_2(%arg0: i32, %arg1: i32, %arg2: i32) -> (i32, i32, i32, i32) {
    %c1_i32 = arith.constant 1 : i32
    %0 = arith.muli %arg1, %c1_i32 : i32
    %1 = arith.addi %0, %arg2 : i32
    %c0_i32 = arith.constant 0 : i32
    %c0_i32_0 = arith.constant 0 : i32
    %c0_i32_1 = arith.constant 0 : i32
    return %arg0, %c0_i32, %1, %c0_i32_0 : i32, i32, i32, i32
  }
  func.func @transform_3(%arg0: i32, %arg1: i32, %arg2: i32) -> (i32, i32) {
    %c1_i32 = arith.constant 1 : i32
    %0 = arith.muli %arg1, %c1_i32 : i32
    %1 = arith.addi %0, %arg2 : i32
    %c0_i32 = arith.constant 0 : i32
    %c0_i32_0 = arith.constant 0 : i32
    return %1, %c0_i32 : i32, i32
  }
  func.func @transform_4(%arg0: i32, %arg1: i32, %arg2: i32) -> (i32, i32, i32, i32) {
    %c0_i32 = arith.constant 0 : i32
    %c0_i32_0 = arith.constant 0 : i32
    %c0_i32_1 = arith.constant 0 : i32
    return %arg0, %arg1, %c0_i32, %c0_i32_0 : i32, i32, i32, i32
  }
  func.func @transform_5(%arg0: i32, %arg1: i32, %arg2: i32) -> (i32, i32, i32, i32) {
    %c0_i32 = arith.constant 0 : i32
    %c0_i32_0 = arith.constant 0 : i32
    %c0_i32_1 = arith.constant 0 : i32
    return %arg0, %arg1, %c0_i32, %c0_i32_0 : i32, i32, i32, i32
  }
}

</mosaic_0001>

<bundles_post_ra>
// kernel: tpu_custom_call.1
= control target key start
LH: loop header
LB: loop body
LE: loop exit
PB: predicated region body
PF: predicated region fallthrough
CT: control target
= control target key end

     0   :  { %s1351_s0 = inlined_call_operand.hbm [shape: f32[2,4], index: 0, kind: input, shape index: {}]   ;;  %s1352_s1 = inlined_call_operand.hbm [shape: f32[2,4,8,128], index: 1, kind: input, shape index: {}]   ;;  %s1353_s2 = inlined_call_operand.hbm [shape: f32[2,4,8,128], index: 2, kind: input, shape index: {}]   ;;  %s1354_s3 = inlined_call_operand.hbm [shape: f32[8,128], index: 3, kind: input, shape index: {}]   ;;  %s1355_s4 = inlined_call_operand.hbm [shape: f32[2,1,8,128], index: 4, kind: output, shape index: {0}]   ;;  %s1356_s5 = inlined_call_operand.hbm [shape: f32[2,1,8,128], index: 5, kind: output, shape index: {1}]  }
   0x1   :  { %1363 = sst [smem:[#allocation24_spill]] %s1351_s0 }
   0x2   :  { %1364 = sst [smem:[#allocation25_spill]] %s1352_s1 }
   0x3   :  { %1365 = sst [smem:[#allocation26_spill]] %s1354_s3 }
   0x4   :  { %11 = vsyncpa [#allocation7], 0 }
   0x5   :  { %12 = vsyncpa [#allocation5], 0 }
   0x6   :  { %14 = vsyncpa [#allocation5 + $0x1], 0 }
   0x7   :  { %15 = vsyncpa [#allocation10], 0 }
   0x8   :  { %17 = vsyncpa [#allocation10 + $0x1], 0 }
   0x9   :  { %18 = vsyncpa [#allocation6], 0 }
   0xa   :  { %20 = vsyncpa [#allocation6 + $0x1], 0 }
   0xb   :  { %21 = vsyncpa [#allocation14], 0 }
   0xc   :  { %23 = vsyncpa [#allocation14 + $0x1], 0  ;;  %s1077_s18 = smov 0   ;;  %s1079_s19 = smov 0  }
   0xd   :  { %s1081_s20 = smov 0   ;;  %s1083_s21 = smov 0  }
   0xe   :  { %s1085_s22 = smov 0   ;;  %s1087_s23 = smov 0  }
   0xf LB: > { %1366 = sst [smem:[#allocation21_spill]] %s1024_s20  ;;  %s1108_s24 = sadd.s32 4294967295, %s1036_s23   ;;  %s1036_s23 = sphi %s1087_s23, %s29_s23   ;;  %s1032_s22 = sphi %s1085_s22, %s1390_s22   ;;  %s1028_s21 = sphi %s1083_s21, %s1389_s21   ;;  %s1024_s20 = sphi %s1081_s20, %s1385_s20   ;;  %s1020_s19 = sphi %s1079_s19, %s1388_s19   ;;  %s1016_s18 = sphi %s1077_s18, %s1387_s18  }
  0x10   : > { %s679_s25 = sadd.s32 4294967294, %s1036_s23   ;;  %s80_s26 = sadd.s32 1, %s1024_s20 }
  0x11   : > { %p87_p0 = scmp.ne.s32.totalorder %s1024_s20, %s1020_s19  ;;  %p88_p1 = scmp.eq.s32.totalorder %s1036_s23, 0 }
  0x12   : > { %p93_p2 = scmp.ne.s32.totalorder %s1020_s19, %s1016_s18  ;;  %p94_p3 = scmp.eq.s32.totalorder %s1108_s24, 0 }
  0x13   : > { %p177_p4 = scmp.eq.s32.totalorder %s1108_s24, 1  ;;  %p1119_p5 = por %p88_p1, %p87_p0 }
  0x14   : > { %p183_p6 = scmp.eq.s32.totalorder %s679_s25, 1  ;;  %p1125_p7 = por %p94_p3, %p93_p2 }
  0x15   : > { %p1129_p8 = por %p177_p4, %p87_p0  ;;  %p680_p10 = scmp.ge.s32.totalorder %s1036_s23, 1 }
  0x16   : > { %s1368_s28 = scalar_select %p1125_p7, 1, 0 }
  0x17   : > { %s1369_s29 = scalar_select %p1129_p8, 1, 0 }
  0x18   : > { %p1133_p9 = por %p183_p6, %p93_p2  ;;  %p218_p11 = scmp.lt.s32.totalorder %s1036_s23, 3 }
  0x19   : > { %s1038_s7 = smov [#allocation11]   ;;  %p752_p1 = scmp.lt.s32.totalorder %s1036_s23, 2 }
  0x1a   : > { %s1370_s30 = scalar_select %p1133_p9, 1, 0 }
  0x1b   : > { %p1140_p13 = pnand %p680_p10, %p218_p11  ;;  %s243_s8 = sshll.u32 %s1038_s7, 4  ;;  %s244_s8 = int_to_ptr.vmem [resolvable:$true] %s243_s8 }
  0x1c   : > { %p1149_p4 = pnand %p752_p1, %p1119_p5  ;;  %s832_s10 = scalar_lea.vmem %s244_s8, 128 }
  0x1d   : > { %s1371_s6 = scalar_select %p1140_p13, 1, 0 }
  0x1e   : > { %p729_p0 = pneg %p1140_p13  ;;  %p833_p10 = scmp.ne.s32.totalorder %s244_s8, %s832_s10 }
  0x1f   : > { %p840_p9 = scmp.lt.s32.totalorder %s244_s8, %s244_s8  ;;  %p841_p8 = scmp.lt.s32.totalorder %s832_s10, %s832_s10 }
  0x20   : > { %p730_p2 = pnand %p729_p0, %p94_p3 }
  0x21   : > { %p842_p7 = por %p841_p8, %p840_p9 }
  0x22   : > { %p823_p6 = pneg %p730_p2 }
  0x24   : > { %p835_p11 = pnand %p833_p10, %p823_p6 }
  0x26   : > { %p836_p12 = pneg %p835_p11 }
  0x28   : > { %p843_p13 = pnand %p842_p7, %p836_p12 }
  0x2a   : > { %846 = shalt.err (!%p843_p13)
}
  0x2b   : > { %s1373_s3 = sld [smem:[#allocation26_spill]]  ;;  %s1039_s13 = smov [#allocation4]  }
  0x2c   : > { %s1374_s0 = sld [smem:[#allocation24_spill]]  ;;  %s48_s16 = sadd.s32 1, %s1032_s22 }
  0x2d   : > { %s254_s17 = sand.u32 1, %s1024_s20   ;;  %p50_p5 = scmp.ge.s32.totalorder %s48_s16, 2 }
  0x2e   : > { %s1163_s25 = sshll.u32 %s254_s17, 5  ;;  %s1360_s27 = sshll.u32 %s1032_s22, 9 }
  0x2f   : > { %s1392_s16 = smov (%p50_p5, %s48_s16), 0  ;;  %s1376_s1 = sld [smem:[#allocation25_spill]] }
  0x30   : > { %1375 = sst [smem:[#allocation22_spill]] %s1392_s16  ;;  %s75_s11 = ssub.s32 %s1032_s22, %s1392_s16 }
  0x31   : > { %735 = dma.hbm_to_vmem [thread:$0]  (!%p730_p2), %s1373_s3, 128, %s244_s8, [#allocation10]  }
  0x32   : > { %732 = dma.hbm_to_smem (!%p730_p2), %s1374_s0, 32, %s1039_s13, [#allocation7]  }
  0x33   : > { %s258_s12 = scalar_lea.vmem [#allocation8], %s1163_s25  ;;  %p78_p7 = scmp.eq.s32.totalorder %s75_s11, 0 }
  0x34   : > { %s267_s14 = sshll.u32 %s258_s12, 4  ;;  %s255_s15 = scalar_lea.sflag [#allocation5], %s254_s17  ;;  %s268_s14 = int_to_ptr.vmem [resolvable:$true] %s267_s14 }
  0x35   : > { %s266_s8 = scalar_lea.hbm %s1376_s1, %s1360_s27  ;;  %p860_p8 = pneg %p1149_p4 }
  0x36   : > { %s1179_s13 = scalar_select %p78_p7, %s1024_s20, %s80_s26  }
  0x37   : > { %s871_s0 = scalar_lea.vmem %s268_s14, 512  ;;  %s1040_s7 = smov [#allocation8]  }
  0x38   : > { %1377 = sst [smem:[#allocation23_spill]] %s1179_s13  ;;  %p872_p9 = scmp.ne.s32.totalorder %s268_s14, %s871_s0 }
  0x39   : > { %s876_s10 = sshll.u32 %s1040_s7, 4  ;;  %s877_s10 = int_to_ptr.vmem [resolvable:$false] %s876_s10 }
  0x3a   : > { %p874_p12 = pnand %p872_p9, %p860_p8  ;;  %s878_s27 = scalar_lea.vmem %s877_s10, 1024 }
  0x3b   : > { %p879_p1 = scmp.lt.s32.totalorder %s268_s14, %s877_s10  ;;  %p880_p0 = scmp.lt.s32.totalorder %s878_s27, %s871_s0 }
  0x3c   : > { %p875_p13 = pneg %p874_p12 }
  0x3d   : > { %p881_p2 = por %p880_p0, %p879_p1 }
  0x3f   : > { %p882_p6 = pnand %p881_p2, %p875_p13 }
  0x41   : > { %885 = shalt.err (!%p882_p6)
}
  0x42   : > { %s1041_s26 = smov 128   ;;  %s1042_s17 = smov 8  }
  0x43   : > { %739 = dma.hbm_to_vmem [thread:$0]  (!%p1149_p4), %s266_s8, 512, %s268_s14, %s255_s15, %s1041_s26, %s1041_s26, %s1042_s17  }
  0x44   : > { %s1378_s11 = sshll.u32 %s1032_s22, 9  ;;  %s281_s3 = scalar_lea.vmem [#allocation9], %s1163_s25 }
  0x45   : > { %s289_s7 = scalar_lea.hbm %s1353_s2, %s1378_s11  ;;  %s290_s10 = sshll.u32 %s281_s3, 4  ;;  %s291_s10 = int_to_ptr.vmem [resolvable:$true] %s290_s10 }
  0x46   : > { %s277_s0 = sand.u32 1, %s1036_s23   ;;  %s899_s16 = scalar_lea.vmem %s291_s10, 512 }
  0x47   : > { %s278_s27 = scalar_lea.sflag [#allocation10], %s277_s0  ;;  %p900_p10 = scmp.ne.s32.totalorder %s291_s10, %s899_s16 }
  0x48   : > { %s1043_s13 = smov [#allocation9]  }
  0x49   : > { %p902_p11 = pnand %p900_p10, %p860_p8  ;;  %s904_s20 = sshll.u32 %s1043_s13, 4  ;;  %s905_s20 = int_to_ptr.vmem [resolvable:$false] %s904_s20 }
  0x4a   : > { %s906_s8 = scalar_lea.vmem %s905_s20, 1024  ;;  %p907_p7 = scmp.lt.s32.totalorder %s291_s10, %s905_s20 }
  0x4b   : > { %p903_p5 = pneg %p902_p11  ;;  %p908_p9 = scmp.lt.s32.totalorder %s906_s8, %s899_s16 }
  0x4d   : > { %p909_p12 = por %p908_p9, %p907_p7 }
  0x4f   : > { %p910_p13 = pnand %p909_p12, %p903_p5 }
  0x51   : > { %913 = shalt.err (!%p910_p13)
}
  0x52   : > { %742 = dma.hbm_to_vmem [thread:$0]  (!%p1149_p4), %s289_s7, 512, %s291_s10, %s278_s27, %s1041_s26, %s1041_s26, %s1042_s17  }
  0x53   : > { %p1379_p1 = scmp.ne.s32.totalorder %s1371_s6, 0 }
  0x55   : > { %302 = sbr.rel (%p1379_p1) target bundleno = 193 (0xc1), region = 36 }
  0x5a   : > { %991 = dma.done.wait (%p94_p3), [#allocation7], 32  }
  0x5b   : > { %993 = vsyncadd (%p94_p3), [#allocation7], 4294967264  ;;  %s1207_s1 = sand.u32 1, %s1020_s19   ;;  %p1380_p8 = scmp.ne.s32.totalorder %s1368_s28, 0 }
  0x5c   : > { %s692_s3 = sshll.u32 %s1207_s1, 5  ;;  %s309_s20 = scalar_lea.sflag [#allocation5], %s1207_s1 }
  0x5d   : > { %s312_s16 = scalar_lea.vmem [#allocation8], %s692_s3 }
  0x5e   : > { %995 = dma.done.wait (%p1380_p8), %s309_s20, 512  }
  0x5f   : > { %997 = vsyncadd (%p1380_p8), %s309_s20, 4294966784  ;;  %s317_s6 = sand.u32 1, %s1108_s24   ;;  %s321_s25 = scalar_lea.vmem [#allocation9], %s692_s3 }
  0x60   : > { %s318_s9 = scalar_lea.sflag [#allocation10], %s317_s6 }
  0x61   : > { %999 = dma.done.wait (%p1380_p8), %s318_s9, 512  }
  0x62   : > { %1001 = vsyncadd (%p1380_p8), %s318_s9, 4294966784 }
  0x63   : > { %1003 = dma.done.wait (%p94_p3), [#allocation10], 128  }
  0x64   : > { %1005 = vsyncadd (%p94_p3), [#allocation10], 4294967168 }
  0x65   : > { %330 = sfence }
  0x66   : > { %v372_v0 = vld [vmem:[%s312_s16] sm:$0xff]  ;;  %v697_v1 = vld [vmem:[%s312_s16 + $0x8] sm:$0xff]  ;;  %v698_v2 = vld [vmem:[%s312_s16 + $0x10] sm:$0xff]  ;;  %s695_s28 = sshll.u32 %s1207_s1, 3  ;;  %s1248_s13 = sshll.u32 %s1028_s21, 7  ;;  %v1044_v22 = vmov 0.0  }
  0x67   : > { %v375_v3 = vmax.f32 %v372_v0, %v697_v1  ;;  %v1224_v4 = vld [vmem:[%s321_s25] sm:$0xff]  ;;  %v1226_v5 = vld [vmem:[%s321_s25 + $0x8] sm:$0xff]  ;;  %v699_v6 = vld [vmem:[%s312_s16 + $0x18] sm:$0xff]  ;;  %s362_s24 = scalar_lea.vmem [#allocation13], %s695_s28  ;;  %s1259_s17 = scalar_lea.hbm %s1356_s5, %s1248_s13 }
  0x68   : > { %v398_v7 = vadd.f32 %v1226_v5, %v1224_v4  ;;  %v1231_v9 = vld [vmem:[%s321_s25 + $0x10] sm:$0xff]  ;;  %v1234_v12 = vld [vmem:[%s321_s25 + $0x18] sm:$0xff]  ;;  %s510_s14 = sshll.u32 %s362_s24, 4  ;;  %s482_s21 = scalar_lea.sflag [#allocation14], %s1207_s1  ;;  %s1253_s14 = int_to_ptr.vmem [resolvable:$true] %s510_s14 }
  0x69   : > { %v378_v8 = vmax.f32 %v375_v3, %v698_v2  ;;  %s914_s11 = scalar_lea.vmem %s1253_s14, 128  ;;  %p1381_p4 = scmp.ne.s32.totalorder %s1369_s29, 0 }
  0x6a   : > { %v407_v10 = vadd.f32 %v1231_v9, %v398_v7  ;;  %p915_p3 = scmp.ne.s32.totalorder %s1253_s14, %s914_s11  ;;  %s1045_s12 = smov [#allocation13]  }
  0x6b   : > { %v381_v11 = vmax.f32 %v378_v8, %v699_v6  ;;  %s918_s7 = sshll.u32 %s1045_s12, 4  ;;  %s919_s7 = int_to_ptr.vmem [resolvable:$false] %s918_s7 }
  0x6c   : > { %v416_v13 = vadd.f32 %v1234_v12, %v407_v10  ;;  %p916_p0 = pnand %p915_p3, %p1381_p4  ;;  %s920_s10 = scalar_lea.vmem %s919_s7, 256 }
  0x6d   : > { %v1237_v14 = vsub.f32 %v372_v0, %v381_v11  ;;  %v1239_v15 = vsub.f32 %v697_v1, %v381_v11  ;;  %v1241_v16 = vsub.f32 %v698_v2, %v381_v11  ;;  %v1243_v17 = vsub.f32 %v699_v6, %v381_v11  ;;  %p921_p6 = scmp.lt.s32.totalorder %s1253_s14, %s919_s7  ;;  %p922_p10 = scmp.lt.s32.totalorder %s920_s10, %s914_s11 }
  0x6e   : > { %vm454_vm0 = vcmp.gt.f32.partialorder %v416_v13, 0.0  ;;  %p917_p2 = pneg %p916_p0 }
  0x6f   : > { %v384_v18 = vmul.f32 1.442695, %v1237_v14  ;;  %v393_v19 = vmul.f32 1.442695, %v1239_v15  ;;  %v402_v20 = vmul.f32 1.442695, %v1241_v16  ;;  %p923_p11 = por %p922_p10, %p921_p6 }
  0x70   : > { %v411_v21 = vmul.f32 1.442695, %v1243_v17  ;;  %v1262_v23 = vsel %vm454_vm0, 1.0, %v1044_v22 }
  0x71   : > { %809 = vpow2.f32 %v384_v18  ;;  %475 = vst [vmem:[%s362_s24] sm:$0xff] %v1262_v23  ;;  %p924_p5 = pnand %p923_p11, %p917_p2 }
  0x72   : > { %811 = vpow2.f32 %v393_v19 }
  0x73   : > { %927 = shalt.err (!%p924_p5)
}
  0x74   : > { %s928_s0 = scalar_lea.hbm %s1259_s17, 128  ;;  %s932_s3 = scalar_lea.hbm %s1356_s5, 256 }
  0x75   : > { %p929_p7 = scmp.ne.s32.totalorder %s1259_s17, %s928_s0  ;;  %p933_p13 = scmp.lt.s32.totalorder %s1259_s17, %s1356_s5 }
  0x76   : > { %p934_p1 = scmp.lt.s32.totalorder %s932_s3, %s928_s0 }
  0x77   : > { %p930_p9 = pnand %p929_p7, %p1381_p4 }
  0x78   : > { %p935_p8 = por %p934_p1, %p933_p13 }
  0x79   : > { %p931_p12 = pneg %p930_p9 }
  0x7b   : > { %p936_p3 = pnand %p935_p8, %p931_p12 }
  0x7d   : > { %939 = shalt.err (!%p936_p3)
}
  0x7e   : > { %726 = dma.vmem_to_hbm [thread:$0]  (%p1381_p4), %s1253_s14, 128, %s1259_s17, %s482_s21   ;;  %813 = vpow2.f32 %v402_v20  ;;  %v810_v24 = vpop.eup %809  ;;  %v458_v62 = vld [vmem:[#allocation11] sm:$0xff] }
  0x7f   : > { %815 = vpow2.f32 %v411_v21  ;;  %v812_v25 = vpop.eup %811  ;;  %v387_v26 = vmul.f32 %v810_v24, %v1224_v4  ;;  %s432_s6 = sadd.s32 1, %s1248_s13  ;;  %s440_s9 = sadd.s32 2, %s1248_s13  ;;  %v459_v2 = vsub.f32 0.0, %v458_v62 }
  0x80   : > { %v395_v28 = vadd.f32 %v812_v25, %v810_v24  ;;  %v396_v29 = vmul.f32 %v812_v25, %v1226_v5  ;;  %s425_s25 = sld [smem:[#allocation4 + %s1248_s13]]  ;;  %s448_s24 = sadd.s32 3, %s1248_s13 }
  0x81   : > { %s433_s14 = sld [smem:[#allocation4 + %s432_s6]]  ;;  %s355_s17 = scalar_lea.vmem [#allocation12], %s695_s28 }
  0x82   : > { %v397_v32 = vadd.f32 %v396_v29, %v387_v26  ;;  %s441_s15 = sld [smem:[#allocation4 + %s440_s9]]  ;;  %s496_s21 = sshll.u32 %s355_s17, 4  ;;  %s1304_s21 = int_to_ptr.vmem [resolvable:$true] %s496_s21 }
  0x83   : > { %s449_s26 = sld [smem:[#allocation4 + %s448_s24]]  ;;  %s494_s7 = scalar_lea.hbm %s1355_s4, %s1248_s13 }
  0x84   : > { %s477_s10 = scalar_lea.sflag [#allocation6], %s1207_s1  ;;  %s940_s0 = scalar_lea.vmem %s1304_s21, 128 }
  0x85   : > { %p941_p0 = scmp.ne.s32.totalorder %s1304_s21, %s940_s0  ;;  %s1046_s28 = smov [#allocation12]  }
  0x86   : > { %v426_v47 = vstv %s425_s25  ;;  %s944_s27 = sshll.u32 %s1046_s28, 4  ;;  %s945_s27 = int_to_ptr.vmem [resolvable:$false] %s944_s27 }
  0x87   : > { %v434_v48 = vstv %s433_s14  ;;  %p942_p2 = pnand %p941_p0, %p1381_p4  ;;  %s946_s8 = scalar_lea.vmem %s945_s27, 256 }
  0x88   : > { %v442_v49 = vstv %s441_s15  ;;  %p947_p10 = scmp.lt.s32.totalorder %s1304_s21, %s945_s27  ;;  %p948_p11 = scmp.lt.s32.totalorder %s946_s8, %s940_s0 }
  0x89   : > { %v450_v50 = vstv %s449_s26  ;;  %p943_p6 = pneg %p942_p2 }
  0x8a   : > { %p949_p5 = por %p948_p11, %p947_p10 }
  0x8b   : > { %v814_v27 = vpop.eup %813 }
  0x8c   : > { %v816_v30 = vpop.eup %815  ;;  %v405_v31 = vmul.f32 %v814_v27, %v1231_v9  ;;  %v404_v33 = vadd.f32 %v814_v27, %v395_v28  ;;  %p950_p7 = pnand %p949_p5, %p943_p6 }
  0x8d   : > { %v414_v34 = vmul.f32 %v816_v30, %v1234_v12 }
  0x8e   : > { %v406_v35 = vadd.f32 %v405_v31, %v397_v32  ;;  %v413_v36 = vadd.f32 %v816_v30, %v404_v33 }
  0x90   : > { %v415_v37 = vadd.f32 %v414_v34, %v406_v35  ;;  %817 = vlog2.f32 %v413_v36 }
  0x92   : > { %819 = vlog2.f32 %v415_v37 }
  0x9d   : > { %v818_v38 = vpop.eup %817 }
  0x9e   : > { %v418_v39 = vmul.f32 0.6931472, %v818_v38 }
  0x9f   : > { %v820_v40 = vpop.eup %819 }
  0xa0   : > { %v420_v41 = vmul.f32 0.6931472, %v820_v40  ;;  %v422_v42 = vsub.f32 %v1237_v14, %v418_v39  ;;  %v430_v43 = vsub.f32 %v1239_v15, %v418_v39  ;;  %v438_v44 = vsub.f32 %v1241_v16, %v418_v39 }
  0xa1   : > { %v446_v45 = vsub.f32 %v1243_v17, %v418_v39 }
  0xa2   : > { %v421_v46 = vsub.f32 %v420_v41, %v418_v39 }
  0xa4   : > { %v423_v51 = vmax.f32 %v422_v42, %v421_v46  ;;  %v431_v52 = vmax.f32 %v430_v43, %v421_v46  ;;  %v439_v53 = vmax.f32 %v438_v44, %v421_v46  ;;  %v447_v54 = vmax.f32 %v446_v45, %v421_v46 }
  0xa6   : > { %v427_v55 = vmul.f32 %v426_v47, %v423_v51  ;;  %v435_v56 = vmul.f32 %v434_v48, %v431_v52  ;;  %v443_v57 = vmul.f32 %v442_v49, %v439_v53  ;;  %v451_v58 = vmul.f32 %v450_v50, %v447_v54 }
  0xa8   : > { %v428_v59 = vmul.f32 %v427_v55, %v1224_v4  ;;  %v436_v60 = vmul.f32 %v1226_v5, %v435_v56  ;;  %v444_v61 = vmul.f32 %v1231_v9, %v443_v57  ;;  %v452_v0 = vmul.f32 %v1234_v12, %v451_v58 }
  0xaa   : > { %v437_v63 = vadd.f32 %v436_v60, %v428_v59 }
  0xac   : > { %v445_v1 = vadd.f32 %v444_v61, %v437_v63 }
  0xae   : > { %v453_v3 = vadd.f32 %v452_v0, %v445_v1 }
  0xb0   : > { %v460_v6 = vmul.f32 %v459_v2, %v453_v3 }
  0xb2   : > { %v461_v4 = vmul.f32 %v1262_v23, %v460_v6 }
  0xb4   : > { %472 = vst [vmem:[%s355_s17] sm:$0xff] %v461_v4 }
  0xb5   : > { %953 = shalt.err (!%p950_p7)
}
  0xb6   : > { %s954_s3 = scalar_lea.hbm %s494_s7, 128  ;;  %s958_s20 = scalar_lea.hbm %s1355_s4, 256 }
  0xb7   : > { %p955_p9 = scmp.ne.s32.totalorder %s494_s7, %s954_s3  ;;  %p959_p1 = scmp.lt.s32.totalorder %s494_s7, %s1355_s4 }
  0xb8   : > { %p960_p8 = scmp.lt.s32.totalorder %s958_s20, %s954_s3 }
  0xb9   : > { %p956_p12 = pnand %p955_p9, %p1381_p4 }
  0xba   : > { %p961_p3 = por %p960_p8, %p959_p1 }
  0xbb   : > { %p957_p13 = pneg %p956_p12 }
  0xbd   : > { %p962_p0 = pnand %p961_p3, %p957_p13 }
  0xbf   : > { %965 = shalt.err (!%p962_p0)
}
  0xc0   : > { %725 = dma.vmem_to_hbm [thread:$0]  (%p1381_p4), %s1304_s21, 128, %s494_s7, %s477_s10  }
  0xc1 PF: > { %s522_s9 = sand.u32 1, %s1016_s18   ;;  %p1382_p2 = scmp.ne.s32.totalorder %s1370_s30, 0 }
  0xc2   : > { %p1383_p6 = scmp.ge.s32.totalorder %s1036_s23, 2  ;;  %s523_s25 = scalar_lea.sflag [#allocation6], %s522_s9 }
  0xc4   : > { %p744_p10 = pnand %p1383_p6, %p1382_p2 }
  0xc6   : > { %p745_p11 = pneg %p744_p10 }
  0xc8   : > { %1007 = dma.done.wait (%p745_p11), %s523_s25, 128  }
  0xc9   : > { %1009 = vsyncadd (%p745_p11), %s523_s25, 4294967168  ;;  %s532_s24 = scalar_lea.sflag [#allocation14], %s522_s9 }
  0xca   : > { %1011 = dma.done.wait (%p745_p11), %s532_s24, 128  }
  0xcb   : > { %1013 = vsyncadd (%p745_p11), %s532_s24, 4294967168  ;;  %s29_s23 = sadd.s32 1, %s1036_s23   ;;  %s1384_s29 = sld [smem:[#allocation21_spill]] }
  0xcc   : > { %p26_p5 = scmp.ge.s32.totalorder %s29_s23, 4   ;;  %s1385_s20 = sld [smem:[#allocation23_spill]] }
  0xcd   : > { %s1386_s14 = sld [smem:[#allocation22_spill]]  ;;  %s1387_s18 = smov %s1020_s19 }
  0xce   : > { %s1389_s21 = smov %s1032_s22 }
  0xcf   :  { %28 = sbr.rel (!%p26_p5) target bundleno = 15 (0xf), region = 135 }
  0xd1   : > { %s1388_s19 = smov %s1384_s29 }
  0xd3   : > { %s1390_s22 = smov %s1386_s14 }
  0xd4   :  { %537 = vsyncpa [#allocation5], 1 }
  0xd5   :  { %539 = vsyncpa [#allocation5 + $0x1], 1 }
  0xd6   :  { %540 = vsyncpa [#allocation10], 1 }
  0xd7   :  { %542 = vsyncpa [#allocation10 + $0x1], 1 }
  0xd8   :  { %543 = vsyncpa [#allocation6], 1 }
  0xd9   :  { %545 = vsyncpa [#allocation6 + $0x1], 1 }
  0xda   :  { %546 = vsyncpa [#allocation14], 1 }
  0xdb   :  { %548 = vsyncpa [#allocation14 + $0x1], 1 }
  0xdc   :  { %549 = vsyncpa [#allocation7], 1 }
  0xdd   :  { %551 = vsyncpa [#allocation7 + $0x1], 1 }

</bundles_post_ra>
